<compile_context>
chip_gen: v5e
topology: v5e:2x2
jax: 0.10.0
libtpu: 0.0.40
codegen_flags: <defaults>
</compile_context>

<pallas_src>
import functools

import jax
import jax.numpy as jnp
from jax import lax
from jax.experimental import pallas as pl
from jax.experimental.pallas import tpu as pltpu

LN_EPS = 1e-5
_SUBLANE = 8
_LANE = 128


def _cdiv(a, b):
    return (a + b - 1) // b


def _round_up(n, m):
    return _cdiv(n, m) * m


def _pick_tile_rows(r, requested):
    """Row tile: as large as requested, but (a) a multiple of 8 (or the full
    row count when tiny) and (b) small enough that the row grid has >= 2 steps
    whenever possible, so v7x's two TensorCores both get work."""
    if r <= _SUBLANE:
        return r                                   # block == full dim (allowed)
    half = _round_up(_cdiv(r, 2), _SUBLANE)        # ceil(r/2) rounded to sublane
    return max(_SUBLANE, min(requested, half))


def _vmem_limit_bytes(*buf_bytes):
    """Double-buffered worst case + headroom; floor at ~scoped default, ceiling
    below v7x's 64 MiB physical VMEM (v5e/v6e have 128 MiB so this is safe)."""
    need = 2 * sum(int(b) for b in buf_bytes)
    return int(min(max(need + (8 << 20), 32 << 20), 60 << 20))


# ---------------------------------------------------------------------------
# Fused PreNorm + Linear kernel:  o = LayerNorm(x) @ W + bias
#   x tile   : (tr, D)    input dtype (f32 or bf16); LN math done in f32
#   g, b     : (1, D)     f32 (pre-cast once)
#   W tile   : (D, tn)    bf16 (pre-cast once) -> MXU with f32 accumulation
#   bias     : (1, tn)    f32
# ---------------------------------------------------------------------------
def _fused_prenorm_linear_kernel(x_ref, g_ref, b_ref, w_ref, bias_ref, o_ref,
                                 *, inv_d, mxu_dtype):
    x = x_ref[...].astype(jnp.float32)                     # (tr, D)
    s1 = jnp.sum(x, axis=-1, keepdims=True)                # single pass: sum
    s2 = jnp.sum(x * x, axis=-1, keepdims=True)            #              sum sq
    mean = s1 * inv_d
    var = jnp.maximum(s2 * inv_d - mean * mean, 0.0)       # clamp: no NaN from cancellation
    inv = lax.rsqrt(var + LN_EPS)                          # EUP rsqrt
    y = (x - mean) * inv * g_ref[...] + b_ref[...]         # f32 LN output
    acc = jnp.dot(y.astype(mxu_dtype), w_ref[...],         # MXU: low-prec operands,
                  preferred_element_type=jnp.float32)      #      f32 accumulate
    o_ref[...] = (acc + bias_ref[...]).astype(o_ref.dtype)


def prepare_prenorm_linear_params(gamma, beta, w, bias, *, use_bf16_mxu=True):
    """One-time parameter prep. Hoisted out of the per-call path so the W cast
    is not a per-forward HBM read+write. Keep use_bf16_mxu=True on v5e/v6e/v7x:
    the MXU natively takes bf16 with f32 accumulation; f32 operands force
    multi-pass matmuls."""
    mxu_dtype = jnp.bfloat16 if use_bf16_mxu else jnp.float32
    return dict(
        gamma=gamma.astype(jnp.float32).reshape(1, -1),
        beta=beta.astype(jnp.float32).reshape(1, -1),
        w=w.astype(mxu_dtype),
        bias=bias.astype(jnp.float32).reshape(1, -1),
    )


def prenorm_linear_pallas(x, params, *, tile_rows=512, tile_out=256,
                          out_dtype=None):
    """Fused PreNorm with fn = Linear:  LayerNorm(x) @ W + bias.

    x: (B, N, D); params from prepare_prenorm_linear_params (gamma/beta (1,D)
    f32, W (D,Dout) bf16/f32, bias (1,Dout) f32). Returns (B, N, Dout) in
    out_dtype (default: x.dtype; pass bf16 x / bf16 out_dtype to halve HBM
    traffic in a bf16 model). No wrapper-side padding or slicing.
    tile_out=256 matches the 256x256 MXU on v6e/v7x; use 128 on v5e.
    """
    B, N, D = x.shape
    g, b, w, bias = params["gamma"], params["beta"], params["w"], params["bias"]
    Din, Dout = w.shape
    assert Din == D and g.shape == (1, D) and b.shape == (1, D)
    assert bias.shape == (1, Dout)
    R = B * N
    out_dtype = x.dtype if out_dtype is None else out_dtype

    tr = _pick_tile_rows(R, tile_rows)
    if Dout <= tile_out:
        tn = Dout                                  # block == full dim (allowed)
    else:
        assert tile_out % _LANE == 0
        tn = tile_out
    grid = (_cdiv(R, tr), _cdiv(Dout, tn))

    x2d = x.reshape(R, D)                          # free reshape (contiguous)

    vmem = _vmem_limit_bytes(
        tr * D * jnp.dtype(x2d.dtype).itemsize,          # x tile
        D * tn * jnp.dtype(w.dtype).itemsize,            # W tile
        tr * tn * jnp.dtype(out_dtype).itemsize,         # out tile
        (2 * D + tn) * 4,                                # gamma/beta/bias
        tr * D * 4 + tr * tn * 4,                        # f32 y / acc temporaries
    )

    kernel = functools.partial(_fused_prenorm_linear_kernel,
                               inv_d=1.0 / D, mxu_dtype=w.dtype)

    out = pl.pallas_call(
        kernel,
        out_shape=jax.ShapeDtypeStruct((R, Dout), out_dtype),
        grid_spec=pltpu.PrefetchScalarGridSpec(
            num_scalar_prefetch=0,
            grid=grid,
            in_specs=[
                pl.BlockSpec((tr, D), lambda i, j: (i, 0)),   # x (constant over j -> no re-DMA)
                pl.BlockSpec((1, D), lambda i, j: (0, 0)),    # gamma (grid-constant)
                pl.BlockSpec((1, D), lambda i, j: (0, 0)),    # beta
                pl.BlockSpec((D, tn), lambda i, j: (0, j)),   # W column tile
                pl.BlockSpec((1, tn), lambda i, j: (0, j)),   # bias tile
            ],
            out_specs=pl.BlockSpec((tr, tn), lambda i, j: (i, j)),
        ),
        compiler_params=pltpu.CompilerParams(
            # rows x Dout-tiles are embarrassingly parallel -> v7x megacore.
            dimension_semantics=("parallel", "parallel"),
            vmem_limit_bytes=vmem),
    )(x2d, g, b, w, bias)
    return out.reshape(B, N, Dout)


# ---------------------------------------------------------------------------
# Standalone LayerNorm kernel (for PreNorm with an arbitrary `fn`).
# ---------------------------------------------------------------------------
def _layernorm_kernel(x_ref, g_ref, b_ref, o_ref, *, inv_d):
    x = x_ref[...].astype(jnp.float32)
    s1 = jnp.sum(x, axis=-1, keepdims=True)
    s2 = jnp.sum(x * x, axis=-1, keepdims=True)
    mean = s1 * inv_d
    var = jnp.maximum(s2 * inv_d - mean * mean, 0.0)
    inv = lax.rsqrt(var + LN_EPS)
    o_ref[...] = ((x - mean) * inv * g_ref[...] + b_ref[...]).astype(o_ref.dtype)


def layernorm_pallas(x, gamma, beta, *, tile_rows=512, out_dtype=None):
    """x: (B, N, D). LayerNorm over last axis; returns (B, N, D) in out_dtype
    (default x.dtype). No wrapper-side padding or slicing."""
    B, N, D = x.shape
    R = B * N
    out_dtype = x.dtype if out_dtype is None else out_dtype
    tr = _pick_tile_rows(R, tile_rows)

    x2d = x.reshape(R, D)
    g = gamma.astype(jnp.float32).reshape(1, D)
    b = beta.astype(jnp.float32).reshape(1, D)

    vmem = _vmem_limit_bytes(
        tr * D * jnp.dtype(x2d.dtype).itemsize,
        tr * D * jnp.dtype(out_dtype).itemsize,
        2 * D * 4,
        tr * D * 4,
    )

    kernel = functools.partial(_layernorm_kernel, inv_d=1.0 / D)
    out = pl.pallas_call(
        kernel,
        out_shape=jax.ShapeDtypeStruct((R, D), out_dtype),
        grid_spec=pltpu.PrefetchScalarGridSpec(
            num_scalar_prefetch=0,
            grid=(_cdiv(R, tr),),
            in_specs=[
                pl.BlockSpec((tr, D), lambda i: (i, 0)),
                pl.BlockSpec((1, D), lambda i: (0, 0)),
                pl.BlockSpec((1, D), lambda i: (0, 0)),
            ],
            out_specs=pl.BlockSpec((tr, D), lambda i: (i, 0)),
        ),
        compiler_params=pltpu.CompilerParams(
            dimension_semantics=("parallel",),
            vmem_limit_bytes=vmem),
    )(x2d, g, b)
    return out.reshape(B, N, D)


# ---------------------------------------------------------------------------
# PreNorm: fn(LayerNorm(x), **kwargs)  -- generic path (fn is any callable).
# Use prenorm_linear_pallas when fn is a Linear for the fused fast path.
# ---------------------------------------------------------------------------
def prenorm(x, gamma, beta, fn, **kwargs):
    return fn(layernorm_pallas(x, gamma, beta), **kwargs)


if __name__ == "__main__":
    key = jax.random.PRNGKey(0)
    B, N, D, D_OUT = 2, 8, 32, 32

    kx, kw, kb = jax.random.split(key, 3)
    x = jax.random.normal(kx, (B, N, D), dtype=jnp.float32)

    # nn.LayerNorm(dim) params: weight=ones(D), bias=zeros(D).
    gamma = jnp.ones((D,), dtype=jnp.float32)
    beta = jnp.zeros((D,), dtype=jnp.float32)

    # Demo `fn`: Linear(D -> D_OUT) with deterministic random weights.
    w_fn = jax.random.normal(kw, (D, D_OUT), dtype=jnp.float32) * 0.02
    b_fn = jax.random.normal(kb, (D_OUT,), dtype=jnp.float32) * 0.02

    # One-time parameter prep (hoisted W cast), then fused PreNorm + Linear.
    params = prepare_prenorm_linear_params(gamma, beta, w_fn, b_fn)
    out = prenorm_linear_pallas(x, params)
    jax.block_until_ready(out)

    # bf16 I/O path (halves HBM bytes when the surrounding model is bf16).
    out_bf16 = prenorm_linear_pallas(x.astype(jnp.bfloat16), params,
                                     out_dtype=jnp.bfloat16)
    jax.block_until_ready(out_bf16)

    # Generic path: standalone LN kernel + arbitrary plain-JAX fn.
    out_generic = prenorm(x, gamma, beta,
                          lambda y: jnp.einsum("bnd,de->bne", y, w_fn) + b_fn)
    jax.block_until_ready(out_generic)

    # Pure-JAX reference of PreNorm semantics.
    mean = jnp.mean(x, axis=-1, keepdims=True)
    var = jnp.mean((x - mean) ** 2, axis=-1, keepdims=True)
    ln_ref = (x - mean) / jnp.sqrt(var + LN_EPS) * gamma + beta
    ref = jnp.einsum("bnd,de->bne", ln_ref, w_fn) + b_fn

    assert out.shape == (B, N, D_OUT)
    # Fused kernel uses bf16 MXU operands (f32 accumulation) -> looser tol.
    assert jnp.allclose(out, ref, atol=1e-2, rtol=1e-2)
    # bf16 I/O loses input precision too -> looser still.
    assert jnp.allclose(out_bf16.astype(jnp.float32), ref, atol=5e-2, rtol=5e-2)
    # Standalone LN kernel is all-f32 -> tight tol.
    assert jnp.allclose(out_generic, ref, atol=1e-4, rtol=1e-4)

    print("KERNEL_OK")
</pallas_src>

<mosaic_0001>
module attributes {stable_mosaic.version = 11 : i64} {
  func.func @_fused_prenorm_linear_kernel(%arg0: i32, %arg1: i32, %arg2: memref<8x32xf32, #tpu.memory_space<vmem>>, %arg3: memref<1x32xf32, #tpu.memory_space<vmem>>, %arg4: memref<1x32xf32, #tpu.memory_space<vmem>>, %arg5: memref<32x32xbf16, #tpu.memory_space<vmem>>, %arg6: memref<1x32xf32, #tpu.memory_space<vmem>>, %arg7: memref<8x32xf32, #tpu.memory_space<vmem>>) attributes {dimension_semantics = [#tpu.dimension_semantics<parallel>, #tpu.dimension_semantics<parallel>], iteration_bounds = array<i64: 2, 1>, scalar_prefetch = 0 : i64, scratch_operands = 0 : i64, tpu.core_type = #tpu.core_type<tc>, window_params = [{transform_indices = @transform_0, window_bounds = array<i64: 8, 32>}, {pipeline_mode = #tpu.pipeline_mode<synchronous>, transform_indices = @transform_1, window_bounds = array<i64: 1, 32>}, {pipeline_mode = #tpu.pipeline_mode<synchronous>, transform_indices = @transform_2, window_bounds = array<i64: 1, 32>}, {transform_indices = @transform_3, window_bounds = array<i64: 32, 32>}, {transform_indices = @transform_4, window_bounds = array<i64: 1, 32>}, {transform_indices = @transform_5, window_bounds = array<i64: 8, 32>}]} {
    %c0 = arith.constant 0 : index
    %c0_0 = arith.constant 0 : index
    %0 = vector.load %arg2[%c0, %c0_0] : memref<8x32xf32, #tpu.memory_space<vmem>>, vector<8x32xf32>
    %cst = arith.constant dense<0.000000e+00> : vector<8xf32>
    %1 = vector.multi_reduction <add>, %0, %cst [1] : vector<8x32xf32> to vector<8xf32>
    %2 = vector.shape_cast %1 : vector<8xf32> to vector<8x1xf32>
    %3 = arith.mulf %0, %0 : vector<8x32xf32>
    %cst_1 = arith.constant dense<0.000000e+00> : vector<8xf32>
    %4 = vector.multi_reduction <add>, %3, %cst_1 [1] : vector<8x32xf32> to vector<8xf32>
    %5 = vector.shape_cast %4 : vector<8xf32> to vector<8x1xf32>
    %cst_2 = arith.constant 3.125000e-02 : f32
    %6 = vector.broadcast %cst_2 : f32 to vector<8x1xf32>
    %7 = arith.mulf %2, %6 : vector<8x1xf32>
    %cst_3 = arith.constant 3.125000e-02 : f32
    %8 = vector.broadcast %cst_3 : f32 to vector<8x1xf32>
    %9 = arith.mulf %5, %8 : vector<8x1xf32>
    %10 = arith.mulf %7, %7 : vector<8x1xf32>
    %11 = arith.subf %9, %10 : vector<8x1xf32>
    %cst_4 = arith.constant 0.000000e+00 : f32
    %12 = vector.broadcast %cst_4 : f32 to vector<8x1xf32>
    %13 = arith.maximumf %11, %12 : vector<8x1xf32>
    %cst_5 = arith.constant 9.99999974E-6 : f32
    %14 = vector.broadcast %cst_5 : f32 to vector<8x1xf32>
    %15 = arith.addf %13, %14 : vector<8x1xf32>
    %16 = math.rsqrt %15 : vector<8x1xf32>
    %17 = vector.broadcast %7 : vector<8x1xf32> to vector<8x32xf32>
    %18 = arith.subf %0, %17 : vector<8x32xf32>
    %19 = vector.broadcast %16 : vector<8x1xf32> to vector<8x32xf32>
    %20 = arith.mulf %18, %19 : vector<8x32xf32>
    %c0_6 = arith.constant 0 : index
    %c0_7 = arith.constant 0 : index
    %21 = vector.load %arg3[%c0_6, %c0_7] : memref<1x32xf32, #tpu.memory_space<vmem>>, vector<1x32xf32>
    %22 = vector.broadcast %21 : vector<1x32xf32> to vector<8x32xf32>
    %23 = arith.mulf %20, %22 : vector<8x32xf32>
    %c0_8 = arith.constant 0 : index
    %c0_9 = arith.constant 0 : index
    %24 = vector.load %arg4[%c0_8, %c0_9] : memref<1x32xf32, #tpu.memory_space<vmem>>, vector<1x32xf32>
    %25 = vector.broadcast %24 : vector<1x32xf32> to vector<8x32xf32>
    %26 = arith.addf %23, %25 : vector<8x32xf32>
    %27 = arith.truncf %26 : vector<8x32xf32> to vector<8x32xbf16>
    %c0_10 = arith.constant 0 : index
    %c0_11 = arith.constant 0 : index
    %28 = vector.load %arg5[%c0_10, %c0_11] : memref<32x32xbf16, #tpu.memory_space<vmem>>, vector<32x32xbf16>
    %cst_12 = arith.constant dense<0.000000e+00> : vector<8x32xf32>
    %29 = tpu.matmul %27, %28, %cst_12 {dimension_numbers = #tpu.dot_dimension_numbers<[1], [0], [0], [1], [0, 0, 1, 1], [], []>} : vector<8x32xbf16>, vector<32x32xbf16>, vector<8x32xf32> -> vector<8x32xf32>
    %c0_13 = arith.constant 0 : index
    %c0_14 = arith.constant 0 : index
    %30 = vector.load %arg6[%c0_13, %c0_14] : memref<1x32xf32, #tpu.memory_space<vmem>>, vector<1x32xf32>
    %31 = vector.broadcast %30 : vector<1x32xf32> to vector<8x32xf32>
    %32 = arith.addf %29, %31 : vector<8x32xf32>
    %c0_15 = arith.constant 0 : index
    %c0_16 = arith.constant 0 : index
    %33 = vector.load %arg7[%c0_15, %c0_16] : memref<8x32xf32, #tpu.memory_space<vmem>>, vector<8x32xf32>
    tpu.vector_store %arg7[%c0_15, %c0_16], %32 {strides = array<i32>} : memref<8x32xf32, #tpu.memory_space<vmem>>, vector<8x32xf32>,
    return
  }
  func.func @transform_0(%arg0: i32, %arg1: i32) -> (i32, i32) {
    %c0_i32 = arith.constant 0 : i32
    %c0_i32_0 = arith.constant 0 : i32
    return %arg0, %c0_i32 : i32, i32
  }
  func.func @transform_1(%arg0: i32, %arg1: i32) -> (i32, i32) {
    %c0_i32 = arith.constant 0 : i32
    %c0_i32_0 = arith.constant 0 : i32
    %c0_i32_1 = arith.constant 0 : i32
    return %c0_i32, %c0_i32_0 : i32, i32
  }
  func.func @transform_2(%arg0: i32, %arg1: i32) -> (i32, i32) {
    %c0_i32 = arith.constant 0 : i32
    %c0_i32_0 = arith.constant 0 : i32
    %c0_i32_1 = arith.constant 0 : i32
    return %c0_i32, %c0_i32_0 : i32, i32
  }
  func.func @transform_3(%arg0: i32, %arg1: i32) -> (i32, i32) {
    %c0_i32 = arith.constant 0 : i32
    %c0_i32_0 = arith.constant 0 : i32
    return %c0_i32, %arg1 : i32, i32
  }
  func.func @transform_4(%arg0: i32, %arg1: i32) -> (i32, i32) {
    %c0_i32 = arith.constant 0 : i32
    %c0_i32_0 = arith.constant 0 : i32
    return %c0_i32, %arg1 : i32, i32
  }
  func.func @transform_5(%arg0: i32, %arg1: i32) -> (i32, i32) {
    %c0_i32 = arith.constant 0 : i32
    return %arg0, %arg1 : i32, i32
  }
}

</mosaic_0001>

<bundles_post_ra>
// kernel: tpu_custom_call.1
= control target key start
LH: loop header
LB: loop body
LE: loop exit
PB: predicated region body
PF: predicated region fallthrough
CT: control target
= control target key end

     0   :  { %10 = vsyncpa [#allocation3], 0  ;;  %s1004_s0 = inlined_call_operand.hbm [shape: f32[16,32], index: 0, kind: input, shape index: {}]   ;;  %s1005_s1 = inlined_call_operand.hbm [shape: f32[1,32], index: 1, kind: input, shape index: {}]   ;;  %s1006_s2 = inlined_call_operand.vmem [shape: f32[1,32], index: 2, kind: input, shape index: {}]   ;;  %s1007_s3 = inlined_call_operand.hbm [shape: bf16[32,32], index: 3, kind: input, shape index: {}]   ;;  %s1008_s4 = inlined_call_operand.vmem [shape: f32[1,32], index: 4, kind: input, shape index: {}]   ;;  %s1009_s5 = inlined_call_operand.hbm [shape: f32[16,32], index: 5, kind: output, shape index: {}]  }
   0x1   :  { %12 = vsyncpa [#allocation3 + $0x1], 0 }
   0x2   :  { %13 = vsyncpa [#allocation6], 0 }
   0x3   :  { %14 = vsyncpa [#allocation4], 0 }
   0x4   :  { %16 = vsyncpa [#allocation4 + $0x1], 0  ;;  %s844_s18 = smov 0   ;;  %s846_s19 = smov 0  }
   0x5   :  { %s848_s20 = smov 0   ;;  %s850_s21 = smov 0  }
   0x6   :  { %s852_s22 = smov 0   ;;  %s854_s23 = smov 0  }
   0x7 LB: > { %s513_s24 = sadd.s32 4294967295, %s808_s23   ;;  %s514_s25 = sadd.s32 4294967294, %s808_s23   ;;  %s808_s23 = sphi %s854_s23, %s22_s23   ;;  %s804_s22 = sphi %s852_s22, %s1019_s22   ;;  %s800_s21 = sphi %s850_s21, %s1018_s21   ;;  %s796_s20 = sphi %s848_s20, %s1017_s20   ;;  %s792_s19 = sphi %s846_s19, %s1016_s19   ;;  %s788_s18 = sphi %s844_s18, %s1015_s18  }
   0x8   : > { %p54_p0 = scmp.ne.s32.totalorder %s792_s19, %s788_s18  ;;  %p880_p1 = scmp.eq.s32.totalorder %s513_s24, 0 }
   0x9   : > { %p180_p2 = scmp.eq.s32.totalorder %s514_s25, 1  ;;  %p515_p4 = scmp.ge.s32.totalorder %s808_s23, 1 }
   0xa   : > { %p886_p3 = por %p880_p1, %p54_p0  ;;  %p187_p6 = scmp.lt.s32.totalorder %s808_s23, 3 }
   0xb   : > { %p891_p5 = por %p180_p2, %p54_p0  ;;  %s199_s6 = sshll.u32 %s1005_s1, 4  ;;  %s200_s6 = int_to_ptr.hbm [resolvable:$true] %s199_s6 }
   0xc   : > { %p899_p7 = pnand %p515_p4, %p187_p6  ;;  %p519_p8 = scmp.ge.s32.totalorder %s808_s23, 2 }
   0xd   : > { %s810_s8 = smov [#allocation5]   ;;  %s215_s12 = sshll.u32 %s1007_s3, 4  ;;  %s216_s12 = int_to_ptr.hbm [resolvable:$true] %s215_s12 }
   0xe   : > { %p554_p9 = pneg %p899_p7  ;;  %s201_s9 = sshll.u32 %s810_s8, 4  ;;  %s202_s9 = int_to_ptr.vmem [resolvable:$true] %s201_s9 }
   0xf   : > { %s811_s13 = smov [#allocation7]   ;;  %s812_s15 = smov 64  }
  0x10   : > { %p555_p10 = pnand %p554_p9, %p880_p1  ;;  %s217_s14 = sshll.u32 %s811_s13, 4  ;;  %s218_s14 = int_to_ptr.vmem [resolvable:$true] %s217_s14 }
  0x11   : > { %s813_s16 = smov 4   ;;  %p174_p11 = scmp.eq.s32.totalorder %s513_s24, 1 }
  0x12   : > { %557 = dma.hbm_to_vmem [thread:$0]  (!%p555_p10), %s200_s6, 16, %s202_s9, [#allocation6]  }
  0x13   : > { %560 = dma.hbm_to_vmem [thread:$0]  (!%p555_p10), %s216_s12, 256, %s218_s14, [#allocation6], %s812_s15, %s812_s15, %s813_s16  }
  0x14   : > { %s34_s17 = sadd.s32 1, %s804_s22  ;;  %s41_s25 = sadd.s32 1, %s796_s20 }
  0x15   : > { %p36_p12 = scmp.ge.s32.totalorder %s34_s17, 2  ;;  %p48_p13 = scmp.ne.s32.totalorder %s796_s20, %s792_s19 }
  0x16   : > { %p49_p0 = scmp.eq.s32.totalorder %s808_s23, 0  ;;  %p571_p4 = scmp.lt.s32.totalorder %s808_s23, 2 }
  0x17   : > { %s1021_s17 = smov (%p36_p12, %s34_s17), 0  ;;  %p920_p2 = por %p174_p11, %p48_p13 }
  0x18   : > { %s38_s30 = ssub.s32 %s804_s22, %s1021_s17  ;;  %s237_s6 = sand.u32 1, %s796_s20  }
  0x19   : > { %p39_p6 = scmp.eq.s32.totalorder %s38_s30, 0  ;;  %p50_p9 = por %p49_p0, %p48_p13 }
  0x1a   : > { %s520_s8 = sshll.u32 %s237_s6, 3  ;;  %s521_s24 = sshll.u32 %s804_s22, 3 }
  0x1b   : > { %s930_s9 = scalar_select %p39_p6, %s796_s20, %s41_s25  }
  0x1c   : > { %s245_s12 = scalar_lea.hbm %s1004_s0, %s521_s24  ;;  %s241_s14 = scalar_lea.vmem [#allocation2], %s520_s8 }
  0x1d   : > { %s247_s13 = sshll.u32 %s245_s12, 4  ;;  %s249_s15 = sshll.u32 %s241_s14, 4  ;;  %s248_s13 = int_to_ptr.hbm [resolvable:$true] %s247_s13  ;;  %s250_s15 = int_to_ptr.vmem [resolvable:$true] %s249_s15 }
  0x1e   : > { %p562_p10 = pnand %p571_p4, %p50_p9  ;;  %s238_s16 = scalar_lea.sflag [#allocation3], %s237_s6 }
  0x1f   : > { %258 = sbr.rel (%p899_p7) target bundleno = 333 (0x14d), region = 40  ;;  %s940_s25 = sand.u32 (!%p899_p7), 1, %s792_s19  }
  0x20   : > { %564 = dma.hbm_to_vmem [thread:$0]  (!%p562_p10), %s248_s13, 128, %s250_s15, %s238_s16  }
  0x21   : > { %s523_s30 = sshll.u32 (!%p899_p7), %s940_s25, 3  ;;  %s261_s24 = scalar_lea.sflag (!%p899_p7), [#allocation3], %s940_s25 }
  0x22   : > { %s264_s8 = scalar_lea.vmem (!%p899_p7), [#allocation2], %s523_s30 }
  0x24   : > { %775 = dma.done.wait (%p886_p3), %s261_s24, 128  }
  0x25   : > { %777 = vsyncadd (%p886_p3), %s261_s24, 4294967168 }
  0x26   : > { %779 = dma.done.wait (%p880_p1), [#allocation6], 272  }
  0x27   : > { %781 = vsyncadd (%p880_p1), [#allocation6], 4294967024  ;;  %vm310_vm0 = vcmask 261120   ;;  %v309_v0 = vld [vmem:[%s264_s8] sm:$0xff]  ;;  %v540_v6 = vld [vmem:[#allocation7] sm:$0xff]  ;;  %s537_s7 = sshll.u32 %s800_s21, 3 }
  0x28   : > { %v311_v1 = vsel %vm310_vm0, %v309_v0, 0.0  ;;  %v314_v2 = vmul.f32 %v309_v0, %v309_v0  ;;  %v541_v5 = vld [vmem:[#allocation7 + $0x8] sm:$0xff]  ;;  %v627_v21 = vld [vmem:[#allocation5] ss:$0 sm:$0xff]  ;;  %s396_s11 = scalar_lea.hbm %s1009_s5, %s537_s7  ;;  %s304_s14 = scalar_lea.vmem [#allocation8], %s523_s30 }
  0x29   : > { %312 = vadd.xlane.f32.xlu0 %v311_v1  ;;  %376 = vmatpush.bf16.msra.mxu0 %v541_v5  ;;  %v628_v24 = vld [vmem:[%s1006_s2] ss:$0 sm:$0xff]  ;;  %s398_s15 = sshll.u32 %s304_s14, 4  ;;  %s400_s16 = sshll.u32 %s396_s11, 4  ;;  %s399_s15 = int_to_ptr.vmem [resolvable:$true] %s398_s15  ;;  %s401_s16 = int_to_ptr.hbm [resolvable:$true] %s400_s16 }
  0x2a   : > { %v315_v3 = vsel %vm310_vm0, %v314_v2, 0.0  ;;  %v629_v28 = vld [vmem:[%s1008_s4] ss:$0 sm:$0xff]  ;;  %s385_s21 = scalar_lea.sflag [#allocation4], %s940_s25  ;;  %s736_s24 = sshra.s32 %s401_s16, 4  ;;  %s737_s24 = int_to_ptr.hbm [resolvable:$true] %s736_s24 }
  0x2b   : > { %s738_s8 = scalar_lea.hbm %s737_s24, 8  ;;  %s742_s30 = scalar_lea.hbm %s1009_s5, 16 }
  0x2c   : > { %p739_p1 = scmp.ne.s32.totalorder %s737_s24, %s738_s8  ;;  %p743_p11 = scmp.lt.s32.totalorder %s737_s24, %s1009_s5 }
  0x2d   : > { %377 = vmatpush.bf16.msra.mxu0 %v540_v6  ;;  %p744_p12 = scmp.lt.s32.totalorder %s742_s30, %s738_s8 }
  0x2e   : > { %p740_p3 = pnand %p739_p1, %p920_p2 }
  0x2f   : > { %p745_p13 = por %p744_p12, %p743_p11 }
  0x30   : > { %p741_p7 = pneg %p740_p3 }
  0x31   : > { %316 = vadd.xlane.f32.xlu0 %v315_v3 }
  0x32   : > { %p746_p0 = pnand %p745_p13, %p741_p7 }
  0x9c   : > { %v313_v4 = vpop.xlane.xlu0 %312 }
  0x9d   : > { %v318_v7 = vmul.f32 0.03125, %v313_v4 }
  0x9f   : > { %v320_v9 = vmul.f32 %v318_v7, %v318_v7  ;;  %v334_v20 = vsub.f32 %v309_v0, %v318_v7 }
  0xa4   : > { %v317_v8 = vpop.xlane.xlu0 %316 }
  0xa5   : > { %v319_v10 = vmul.f32 0.03125, %v317_v8 }
  0xa7   : > { %v321_v11 = vsub.f32 %v319_v10, %v320_v9 }
  0xa9   : > { %v322_v12 = vmax.f32 %v321_v11, 0.0 }
  0xab   : > { %v323_v13 = vadd.f32 1e-05, %v322_v12 }
  0xad   : > { %630 = vrsqrt.f32 %v323_v13  ;;  %vm330_vm2 = vweird.f32 %v323_v13 }
  0xb3   : > { %v631_v14 = vpop.eup %630 }
  0xb4   : > { %v325_v15 = vmul.f32 %v631_v14, %v323_v13  ;;  %vm331_vm1 = vweird.f32 %v631_v14 }
  0xb5   : > { %vm332_vm3 = vmor %vm330_vm2, %vm331_vm1 }
  0xb6   : > { %v326_v16 = vmul.f32 %v631_v14, %v325_v15 }
  0xb8   : > { %v327_v17 = vmul.f32 0.5, %v326_v16 }
  0xba   : > { %v328_v18 = vsub.f32 1.5, %v327_v17 }
  0xbc   : > { %v329_v19 = vmul.f32 %v631_v14, %v328_v18 }
  0xbe   : > { %v333_v22 = vsel %vm332_vm3, %v631_v14, %v329_v19 }
  0xbf   : > { %v335_v23 = vmul.f32 %v334_v20, %v333_v22 }
  0xc1   : > { %v340_v25 = vmul.f32 %v627_v21, %v335_v23 }
  0xc3   : > { %v345_v26 = vadd.f32 %v628_v24, %v340_v25 }
  0xc5   : > { %v346_v27 = vpack.c.bf16 %v345_v26, %v345_v26 }
  0xc7   : > { %535 = vmatmul.msk.bf16.vlgmr.msra.gmra.mxu0 %vm310_vm0, %v346_v27 }
 0x144   : > { %v379_v29 = vpop.f32.mrf.mxu0 }
 0x145   : > { %v380_v30 = vadd.f32 %v629_v28, %v379_v29 }
 0x147   : > { %383 = vst.msk [vmem:[%s304_s14] sm:$0xff] %vm310_vm0, %v380_v30 }
 0x148   : > { %749 = shalt.err (!%p746_p0)
}
 0x149   : > { %552 = dma.vmem_to_hbm [thread:$0]  (%p920_p2), %s399_s15, 128, %s401_s16, %s385_s21  }
 0x14c   : > { %v381_v31 = vpop.f32.mrf.mxu0 }
 0x14d PF: > { %s412_s25 = sand.u32 1, %s788_s18   ;;  %p566_p4 = pnand %p519_p8, %p891_p5 }
 0x14e   : > { %s413_s10 = scalar_lea.sflag [#allocation4], %s412_s25 }
 0x14f   : > { %p567_p6 = pneg %p566_p4 }
 0x151   : > { %783 = dma.done.wait (%p567_p6), %s413_s10, 128  }
 0x152   : > { %785 = vsyncadd (%p567_p6), %s413_s10, 4294967168  ;;  %s22_s23 = sadd.s32 1, %s808_s23   ;;  %s1015_s18 = smov %s792_s19 }
 0x153   : > { %p19_p9 = scmp.ge.s32.totalorder %s22_s23, 4   ;;  %s1016_s19 = smov %s796_s20 }
 0x154   : > { %s1017_s20 = smov %s930_s9  ;;  %s1018_s21 = smov %s804_s22 }
 0x155   : > { %s1019_s22 = smov %s1021_s17  ;;  %21 = sbr.rel (!%p19_p9) target bundleno = 7 (0x7), region = 97 }
 0x15a   :  { %419 = vsyncpa [#allocation3], 1 }
 0x15b   :  { %421 = vsyncpa [#allocation3 + $0x1], 1 }
 0x15c   :  { %422 = vsyncpa [#allocation6], 1 }
 0x15d   :  { %423 = vsyncpa [#allocation4], 1 }
 0x15e   :  { %425 = vsyncpa [#allocation4 + $0x1], 1 }

</bundles_post_ra>
